<compile_context>
chip_gen: v7x
topology: tpu7x:2x2x1
jax: 0.10.0
libtpu: 0.0.40
codegen_flags: <defaults>
</compile_context>

<pallas_src>
import functools

import jax
import jax.numpy as jnp
from jax.experimental import pallas as pl
from jax.experimental.pallas import tpu as pltpu


def _round_up(x, m):
    return ((x + m - 1) // m) * m


def _pick_tile(l_out, c_in_p, c_out_p, itemsize,
               vmem_budget_bytes=16 * 1024 * 1024):
    """Largest length tile (multiple of 128, <= 2048) whose double-buffered
    working set fits the VMEM budget."""
    max_tl = _round_up(max(l_out, 1), 128)
    # bytes per lane column: 2x input buffer, 2x output buffer, staging
    # scratch, plus f32 accumulator / matmul temporaries.
    per_col = (2 * c_in_p + 2 * c_out_p + c_in_p) * itemsize + 4 * c_out_p * 4
    budget_tl = max(128, (vmem_budget_bytes // per_col) // 128 * 128)
    return max(128, min(max_tl, 2048, budget_tl))


def _sepconv_kernel(x_ref, halo_ref, wf_ref, b_ref, out_ref, ext_ref, *,
                    K, TL, HALO):
    # x_ref    : (1, C_in_p, TL)         current length tile (native dtype)
    # halo_ref : (1, 1, C_in_p, HALO)    K-1 columns to the right of the tile
    # wf_ref   : (K, C_out_p, C_in_p)    folded depthwise*pointwise weights
    # b_ref    : (C_out_p, 1)            bias (f32)
    # out_ref  : (1, C_out_p, TL)
    # ext_ref  : (C_in_p, TL + pad)      VMEM staging scratch (native dtype)

    # Stage tile + halo into one lane-aligned buffer; no f32 materialization.
    ext_ref[:, :TL] = x_ref[0]
    ext_ref[:, TL:TL + HALO] = halo_ref[0, 0]
    ext = ext_ref[...]

    # K accumulating MXU matmuls; only the accumulator is f32.
    acc = jnp.dot(wf_ref[0], ext[:, 0:TL],
                  preferred_element_type=jnp.float32)
    for k in range(1, K):
        acc = acc + jnp.dot(wf_ref[k], ext[:, k:k + TL],
                            preferred_element_type=jnp.float32)

    acc = acc + b_ref[...].astype(jnp.float32)      # (C_out_p,1) broadcast
    out_ref[0] = acc.astype(out_ref.dtype)


def separable_conv1d(x, w_depthwise, w_pointwise, bias, kernel_size):
    """x: (N, C_in, L) -> (N, C_out, L_out), matching
    nn.Conv1d(C_in, C_in, K, groups=C_in, padding=(K-1)//2, bias=False)
    followed by nn.Conv1d(C_in, C_out, 1, bias=False) plus a (C_out, 1) bias."""
    N, C_in, L = x.shape
    C_out = w_pointwise.shape[0]
    K = int(kernel_size)
    pad = (K - 1) // 2
    L_out = L + 2 * pad - (K - 1)
    HALO = max(K - 1, 1)

    dtype = x.dtype
    itemsize = jnp.dtype(dtype).itemsize
    C_in_p = _round_up(C_in, 8)
    C_out_p = _round_up(C_out, 8)

    TL = _pick_tile(L_out, C_in_p, C_out_p, itemsize)
    n_tiles = -(-L_out // TL)
    Lp = n_tiles * TL

    # Single pad op: channels up to a sublane multiple, conv padding on the
    # left and zero-fill up to Lp + HALO on the right.
    right = Lp + HALO - pad - L
    x_full = jnp.pad(x, ((0, 0), (0, C_in_p - C_in), (pad, right)))
    # TODO(synk): the halo columns / padding could be handled fully in-kernel
    # (manual DMA + pl.when zero fill) to avoid this one extra padded copy.

    # Halo side-array: halo[n, j, :, h] = x_full[n, :, (j+1)*TL + h]
    idx = (jnp.arange(n_tiles)[:, None] + 1) * TL + jnp.arange(HALO)[None, :]
    halo = jnp.transpose(x_full[:, :, idx], (0, 2, 1, 3))  # (N, n_tiles, C_in_p, HALO)

    # Fold depthwise into pointwise: W_k[o, c] = wpw[o, c] * wdw[c, k].
    wdw = jnp.zeros((C_in_p, K), jnp.float32).at[:C_in].set(
        w_depthwise.astype(jnp.float32))
    wpw = jnp.zeros((C_out_p, C_in_p), jnp.float32).at[:C_out, :C_in].set(
        w_pointwise.astype(jnp.float32))
    wfold = (wpw[None, :, :] * wdw.T[:, None, :]).astype(dtype)  # (K, C_out_p, C_in_p)
    bias_p = jnp.zeros((C_out_p, 1), jnp.float32).at[:C_out].set(
        bias.astype(jnp.float32))

    kernel = functools.partial(_sepconv_kernel, K=K, TL=TL, HALO=HALO)

    out_p = pl.pallas_call(
        kernel,
        out_shape=jax.ShapeDtypeStruct((N, C_out_p, Lp), dtype),
        grid_spec=pltpu.PrefetchScalarGridSpec(
            num_scalar_prefetch=0,
            grid=(N, n_tiles),
            in_specs=[
                pl.BlockSpec((1, C_in_p, TL), lambda n, j: (n, 0, j)),
                pl.BlockSpec((1, 1, C_in_p, HALO), lambda n, j: (n, j, 0, 0)),
                pl.BlockSpec((K, C_out_p, C_in_p), lambda n, j: (0, 0, 0)),
                pl.BlockSpec((C_out_p, 1), lambda n, j: (0, 0)),
            ],
            out_specs=pl.BlockSpec((1, C_out_p, TL), lambda n, j: (n, 0, j)),
            scratch_shapes=[
                pltpu.VMEM((C_in_p, TL + _round_up(HALO, 128)), dtype),
            ],
        ),
        compiler_params=pltpu.CompilerParams(
            dimension_semantics=("parallel", "parallel"),
            vmem_limit_bytes=32 * 1024 * 1024,
        ),
    )(x_full, halo, wfold, bias_p)

    return out_p[:, :C_out, :L_out]


def separable_conv1d_ref(x, w_depthwise, w_pointwise, bias, kernel_size):
    """Pure-JAX reference mirroring the PyTorch module."""
    N, C_in, L = x.shape
    K = kernel_size
    pad = (K - 1) // 2
    L_out = L + 2 * pad - (K - 1)
    x_pad = jnp.pad(x, ((0, 0), (0, 0), (pad, pad)))
    dw = jnp.zeros((N, C_in, L_out), jnp.float32)
    for k in range(K):
        dw = dw + x_pad[:, :, k:k + L_out].astype(jnp.float32) * \
            w_depthwise[None, :, k:k + 1].astype(jnp.float32)
    out = jnp.einsum("oc,ncl->nol", w_pointwise.astype(jnp.float32), dw)
    out = out + bias.astype(jnp.float32)[None, :, :]
    return out.astype(x.dtype)


if __name__ == "__main__":
    # Small shapes consistent with the module's forward: (batch, in_ch, length)
    N, C_in, C_out, L, K = 2, 4, 8, 16, 3

    key = jax.random.PRNGKey(0)
    k_x, k_dw, k_pw, k_b = jax.random.split(key, 4)

    x = jax.random.normal(k_x, (N, C_in, L), dtype=jnp.float32)
    # nn.Conv1d(C_in, C_in, K, groups=C_in, bias=False): weight (C_in,1,K) -> (C_in,K)
    w_depthwise = jax.random.normal(k_dw, (C_in, K), dtype=jnp.float32) * 0.1
    # nn.Conv1d(C_in, C_out, 1, bias=False): weight (C_out,C_in,1) -> (C_out,C_in)
    w_pointwise = jax.random.normal(k_pw, (C_out, C_in), dtype=jnp.float32) * 0.1
    # nn.Parameter(torch.zeros(C_out, 1)) -- use nonzero values to exercise the add
    bias = jax.random.normal(k_b, (C_out, 1), dtype=jnp.float32) * 0.1

    out = separable_conv1d(x, w_depthwise, w_pointwise, bias, K)
    out = jax.block_until_ready(out)

    ref = separable_conv1d_ref(x, w_depthwise, w_pointwise, bias, K)
    assert out.shape == (N, C_out, L), out.shape
    assert jnp.allclose(out, ref, atol=1e-4, rtol=1e-4), \
        float(jnp.max(jnp.abs(out - ref)))

    print("KERNEL_OK")
</pallas_src>

<mosaic_0001>
module attributes {stable_mosaic.version = 11 : i64} {
  func.func @_sepconv_kernel(%arg0: i32, %arg1: i32, %arg2: memref<1x8x128xf32, #tpu.memory_space<vmem>>, %arg3: memref<1x1x8x2xf32, #tpu.memory_space<vmem>>, %arg4: memref<3x8x8xf32, #tpu.memory_space<vmem>>, %arg5: memref<8x1xf32, #tpu.memory_space<vmem>>, %arg6: memref<1x8x128xf32, #tpu.memory_space<vmem>>, %arg7: memref<8x256xf32, #tpu.memory_space<vmem>>) attributes {dimension_semantics = [#tpu.dimension_semantics<parallel>, #tpu.dimension_semantics<parallel>], iteration_bounds = array<i64: 2, 1>, scalar_prefetch = 0 : i64, scratch_operands = 1 : i64, tpu.core_type = #tpu.core_type<tc>, window_params = [{transform_indices = @transform_0, window_bounds = array<i64: 1, 8, 128>}, {transform_indices = @transform_1, window_bounds = array<i64: 1, 1, 8, 2>}, {pipeline_mode = #tpu.pipeline_mode<synchronous>, transform_indices = @transform_2, window_bounds = array<i64: 3, 8, 8>}, {pipeline_mode = #tpu.pipeline_mode<synchronous>, transform_indices = @transform_3, window_bounds = array<i64: 8, 1>}, {transform_indices = @transform_4, window_bounds = array<i64: 1, 8, 128>}]} {
    %c0 = arith.constant 0 : index
    %c0_0 = arith.constant 0 : index
    %c0_1 = arith.constant 0 : index
    %0 = vector.load %arg2[%c0, %c0_0, %c0_1] : memref<1x8x128xf32, #tpu.memory_space<vmem>>, vector<1x8x128xf32>
    %1 = vector.shape_cast %0 : vector<1x8x128xf32> to vector<8x128xf32>
    %c0_2 = arith.constant 0 : index
    %c0_3 = arith.constant 0 : index
    %2 = vector.load %arg7[%c0_2, %c0_3] : memref<8x256xf32, #tpu.memory_space<vmem>>, vector<8x128xf32>
    tpu.vector_store %arg7[%c0_2, %c0_3], %1 {strides = array<i32>} : memref<8x256xf32, #tpu.memory_space<vmem>>, vector<8x128xf32>,
    %c0_4 = arith.constant 0 : index
    %c0_5 = arith.constant 0 : index
    %c0_6 = arith.constant 0 : index
    %c0_7 = arith.constant 0 : index
    %3 = vector.load %arg3[%c0_4, %c0_5, %c0_6, %c0_7] : memref<1x1x8x2xf32, #tpu.memory_space<vmem>>, vector<1x1x8x2xf32>
    %4 = vector.shape_cast %3 : vector<1x1x8x2xf32> to vector<8x2xf32>
    %c0_8 = arith.constant 0 : index
    %c128 = arith.constant 128 : index
    %5 = vector.load %arg7[%c0_8, %c128] : memref<8x256xf32, #tpu.memory_space<vmem>>, vector<8x2xf32>
    tpu.vector_store %arg7[%c0_8, %c128], %4 {strides = array<i32>} : memref<8x256xf32, #tpu.memory_space<vmem>>, vector<8x2xf32>,
    %c0_9 = arith.constant 0 : index
    %c0_10 = arith.constant 0 : index
    %6 = vector.load %arg7[%c0_9, %c0_10] : memref<8x256xf32, #tpu.memory_space<vmem>>, vector<8x256xf32>
    %c0_11 = arith.constant 0 : index
    %c0_12 = arith.constant 0 : index
    %c0_13 = arith.constant 0 : index
    %7 = vector.load %arg4[%c0_11, %c0_12, %c0_13] : memref<3x8x8xf32, #tpu.memory_space<vmem>>, vector<1x8x8xf32>
    %8 = vector.shape_cast %7 : vector<1x8x8xf32> to vector<8x8xf32>
    %9 = vector.extract_strided_slice %6 {offsets = [0, 0], sizes = [8, 128], strides = [1, 1]} : vector<8x256xf32> to vector<8x128xf32>
    %cst = arith.constant dense<0.000000e+00> : vector<8x128xf32>
    %10 = tpu.matmul %8, %9, %cst {dimension_numbers = #tpu.dot_dimension_numbers<[1], [0], [0], [1], [0, 0, 1, 1], [], []>} : vector<8x8xf32>, vector<8x128xf32>, vector<8x128xf32> -> vector<8x128xf32>
    %c1 = arith.constant 1 : index
    %c0_14 = arith.constant 0 : index
    %c0_15 = arith.constant 0 : index
    %11 = vector.load %arg4[%c1, %c0_14, %c0_15] : memref<3x8x8xf32, #tpu.memory_space<vmem>>, vector<1x8x8xf32>
    %12 = vector.shape_cast %11 : vector<1x8x8xf32> to vector<8x8xf32>
    %13 = vector.extract_strided_slice %6 {offsets = [0, 1], sizes = [8, 128], strides = [1, 1]} : vector<8x256xf32> to vector<8x128xf32>
    %cst_16 = arith.constant dense<0.000000e+00> : vector<8x128xf32>
    %14 = tpu.matmul %12, %13, %cst_16 {dimension_numbers = #tpu.dot_dimension_numbers<[1], [0], [0], [1], [0, 0, 1, 1], [], []>} : vector<8x8xf32>, vector<8x128xf32>, vector<8x128xf32> -> vector<8x128xf32>
    %15 = arith.addf %10, %14 : vector<8x128xf32>
    %c2 = arith.constant 2 : index
    %c0_17 = arith.constant 0 : index
    %c0_18 = arith.constant 0 : index
    %16 = vector.load %arg4[%c2, %c0_17, %c0_18] : memref<3x8x8xf32, #tpu.memory_space<vmem>>, vector<1x8x8xf32>
    %17 = vector.shape_cast %16 : vector<1x8x8xf32> to vector<8x8xf32>
    %18 = vector.extract_strided_slice %6 {offsets = [0, 2], sizes = [8, 128], strides = [1, 1]} : vector<8x256xf32> to vector<8x128xf32>
    %cst_19 = arith.constant dense<0.000000e+00> : vector<8x128xf32>
    %19 = tpu.matmul %17, %18, %cst_19 {dimension_numbers = #tpu.dot_dimension_numbers<[1], [0], [0], [1], [0, 0, 1, 1], [], []>} : vector<8x8xf32>, vector<8x128xf32>, vector<8x128xf32> -> vector<8x128xf32>
    %20 = arith.addf %15, %19 : vector<8x128xf32>
    %c0_20 = arith.constant 0 : index
    %c0_21 = arith.constant 0 : index
    %21 = vector.load %arg5[%c0_20, %c0_21] : memref<8x1xf32, #tpu.memory_space<vmem>>, vector<8x1xf32>
    %22 = vector.broadcast %21 : vector<8x1xf32> to vector<8x128xf32>
    %23 = arith.addf %20, %22 : vector<8x128xf32>
    %c0_22 = arith.constant 0 : index
    %c0_23 = arith.constant 0 : index
    %c0_24 = arith.constant 0 : index
    %24 = vector.load %arg6[%c0_22, %c0_23, %c0_24] : memref<1x8x128xf32, #tpu.memory_space<vmem>>, vector<1x8x128xf32>
    %25 = vector.shape_cast %24 : vector<1x8x128xf32> to vector<8x128xf32>
    %26 = vector.shape_cast %23 : vector<8x128xf32> to vector<1x8x128xf32>
    tpu.vector_store %arg6[%c0_22, %c0_23, %c0_24], %26 {strides = array<i32>} : memref<1x8x128xf32, #tpu.memory_space<vmem>>, vector<1x8x128xf32>,
    return
  }
  func.func @transform_0(%arg0: i32, %arg1: i32) -> (i32, i32, i32) {
    %c0_i32 = arith.constant 0 : i32
    %c0_i32_0 = arith.constant 0 : i32
    return %arg0, %c0_i32, %arg1 : i32, i32, i32
  }
  func.func @transform_1(%arg0: i32, %arg1: i32) -> (i32, i32, i32, i32) {
    %c0_i32 = arith.constant 0 : i32
    %c0_i32_0 = arith.constant 0 : i32
    %c0_i32_1 = arith.constant 0 : i32
    return %arg0, %arg1, %c0_i32, %c0_i32_0 : i32, i32, i32, i32
  }
  func.func @transform_2(%arg0: i32, %arg1: i32) -> (i32, i32, i32) {
    %c0_i32 = arith.constant 0 : i32
    %c0_i32_0 = arith.constant 0 : i32
    %c0_i32_1 = arith.constant 0 : i32
    %c0_i32_2 = arith.constant 0 : i32
    return %c0_i32, %c0_i32_0, %c0_i32_1 : i32, i32, i32
  }
  func.func @transform_3(%arg0: i32, %arg1: i32) -> (i32, i32) {
    %c0_i32 = arith.constant 0 : i32
    %c0_i32_0 = arith.constant 0 : i32
    %c0_i32_1 = arith.constant 0 : i32
    return %c0_i32, %c0_i32_0 : i32, i32
  }
  func.func @transform_4(%arg0: i32, %arg1: i32) -> (i32, i32, i32) {
    %c0_i32 = arith.constant 0 : i32
    %c0_i32_0 = arith.constant 0 : i32
    return %arg0, %c0_i32, %arg1 : i32, i32, i32
  }
}

</mosaic_0001>

<bundles_post_ra>
// kernel: tpu_custom_call.1
= control target key start
LH: loop header
LB: loop body
LE: loop exit
PB: predicated region body
PF: predicated region fallthrough
CT: control target
= control target key end

     0   :  { %9 = vsyncpa [#allocation4], 0  ;;  %s1082_s0 = inlined_call_operand.hbm [shape: f32[2,8,130], index: 0, kind: input, shape index: {}]   ;;  %s1083_s1 = inlined_call_operand.vmem [shape: f32[2,1,8,2], index: 1, kind: input, shape index: {}]   ;;  %s1084_s2 = inlined_call_operand.vmem [shape: f32[3,8,8], index: 2, kind: input, shape index: {}]   ;;  %s1085_s3 = inlined_call_operand.vmem [shape: f32[8,1], index: 3, kind: input, shape index: {}]   ;;  %s1086_s4 = inlined_call_operand.hbm [shape: f32[2,8,128], index: 4, kind: output, shape index: {}]  }
   0x1   :  { %11 = vsyncpa [#allocation4 + $0x1], 0 }
   0x2   :  { %12 = vsyncpa [#allocation5], 0 }
   0x3   :  { %14 = vsyncpa [#allocation5 + $0x1], 0  ;;  %s883_s15 = smov 0   ;;  %s885_s16 = smov 0  }
   0x4   :  { %s887_s17 = smov 0   ;;  %s889_s18 = smov 0  }
   0x5   :  { %s891_s19 = smov 0   ;;  %s893_s20 = smov 0  }
   0x6 LB: > { %s627_s21 = sadd.s32 4294967295, %s849_s20   ;;  %s628_s22 = sadd.s32 4294967294, %s849_s20   ;;  %s849_s20 = sphi %s893_s20, %s20_s20   ;;  %s845_s19 = sphi %s891_s19, %s1102_s19   ;;  %s841_s18 = sphi %s889_s18, %s1101_s18   ;;  %s837_s17 = sphi %s887_s17, %s1100_s17   ;;  %s833_s16 = sphi %s885_s16, %s1099_s16   ;;  %s829_s15 = sphi %s883_s15, %s1098_s15  }
   0x7   : > { %s32_s23 = sadd.s32 1, %s845_s19  ;;  %s41_s24 = sadd.s32 1, %s837_s17 }
   0x8   : > { %p34_p0 = scmp.ge.s32.totalorder %s32_s23, 2  ;;  %p48_p1 = scmp.ne.s32.totalorder %s837_s17, %s833_s16 }
   0x9   : > { %p49_p2 = scmp.eq.s32.totalorder %s849_s20, 0  ;;  %p54_p3 = scmp.ne.s32.totalorder %s833_s16, %s829_s15 }
   0xa   : > { %s1104_s23 = smov (%p34_p0, %s32_s23), 0  ;;  %p55_p5 = scmp.eq.s32.totalorder %s627_s21, 0 }
   0xb   : > { %p924_p4 = por %p49_p2, %p48_p1  ;;  %s36_s26 = ssub.s32 %s845_s19, %s1104_s23 }
   0xc   : > { %p150_p6 = scmp.eq.s32.totalorder %s627_s21, 1  ;;  %p39_p7 = scmp.eq.s32.totalorder %s36_s26, 0 }
   0xd   : > { %p930_p8 = por %p55_p5, %p54_p3  ;;  %p156_p10 = scmp.eq.s32.totalorder %s628_s22, 1 }
   0xe   : > { %p934_p9 = por %p150_p6, %p48_p1  ;;  %p681_p13 = scmp.lt.s32.totalorder %s849_s20, 2 }
   0xf   : > { %s939_s29 = scalar_select %p39_p7, %s837_s17, %s41_s24  }
  0x10   : > { %s1090_s28 = scalar_select %p934_p9, 1, 0 }
  0x11   : > { %p941_p11 = por %p156_p10, %p54_p3  ;;  %s182_s5 = sand.u32 1, %s837_s17  }
  0x12   : > { %s631_s6 = sshll.u32 %s182_s5, 3  ;;  %s647_s7 = sshll.u32 %s845_s19, 8 }
  0x13   : > { %s1091_s30 = scalar_select %p941_p11, 1, 0 }
  0x14   : > { %s952_s10 = scalar_lea.hbm %s1082_s0, %s647_s7  ;;  %s186_s11 = scalar_lea.vmem [#allocation3], %s631_s6 }
  0x15   : > { %s195_s12 = sshll.u32 %s186_s11, 4  ;;  %p958_p0 = pnand %p681_p13, %p924_p4  ;;  %s954_s12 = int_to_ptr.vmem [resolvable:$true] %s195_s12 }
  0x16   : > { %s183_s14 = scalar_lea.sflag [#allocation4], %s182_s5  ;;  %s737_s21 = scalar_lea.hbm %s952_s10, 128 }
  0x17   : > { %p738_p3 = scmp.ne.s32.totalorder %s952_s10, %s737_s21  ;;  %p739_p5 = pneg %p958_p0 }
  0x18   : > { %s742_s25 = scalar_lea.hbm %s1082_s0, 512  ;;  %p743_p4 = scmp.lt.u32.totalorder %s952_s10, %s1082_s0 }
  0x19   : > { %p740_p6 = pnand %p739_p5, %p738_p3  ;;  %p744_p10 = scmp.lt.u32.totalorder %s742_s25, %s737_s21 }
  0x1a   : > { %p746_p12 = scmp.lt.u32.totalorder %s737_s21, %s952_s10 }
  0x1b   : > { %p741_p7 = pneg %p740_p6  ;;  %p745_p13 = por %p744_p10, %p743_p4 }
  0x1d   : > { %p747_p1 = por %p746_p12, %p745_p13 }
  0x1f   : > { %p748_p2 = pnand %p747_p1, %p741_p7 }
  0x21   : > { %751 = shalt.err (!%p748_p2)
}
  0x22   : > { %s752_s5 = scalar_lea.vmem %s954_s12, 128  ;;  %s851_s7 = smov [#allocation3]  }
  0x23   : > { %p753_p3 = scmp.ne.s32.totalorder %s954_s12, %s752_s5  ;;  %s757_s8 = sshll.u32 %s851_s7, 4  ;;  %s758_s8 = int_to_ptr.vmem [resolvable:$false] %s757_s8 }
  0x24   : > { %s759_s9 = scalar_lea.vmem %s758_s8, 256  ;;  %p760_p9 = scmp.lt.s32.totalorder %s954_s12, %s758_s8 }
  0x25   : > { %p755_p6 = pnand %p753_p3, %p739_p5  ;;  %p761_p4 = scmp.lt.s32.totalorder %s759_s9, %s752_s5 }
  0x27   : > { %p756_p11 = pneg %p755_p6  ;;  %p762_p10 = por %p761_p4, %p760_p9 }
  0x29   : > { %p763_p12 = pnand %p762_p10, %p756_p11 }
  0x2b   : > { %766 = shalt.err (!%p763_p12)
}
  0x2c   : > { %676 = dma.hbm_to_vmem [thread:$0]  (!%p958_p0), %s952_s10, 128, %s954_s12, %s183_s14  }
  0x2d   : > { %p1093_p1 = scmp.lt.s32.totalorder %s849_s20, 3  ;;  %p1094_p2 = scmp.ge.s32.totalorder %s849_s20, 1 }
  0x2f   : > { %p211_p5 = pnand %p1094_p2, %p1093_p1 }
  0x30   : > { %s994_s11 = sand.u32 (!%p211_p5), 1, %s833_s16  }
  0x31   : > { %214 = sbr.rel (%p211_p5) target bundleno = 423 (0x1a7), region = 36  ;;  %s635_s21 = sshll.u32 (!%p211_p5), %s994_s11, 3 }
  0x32   : > { %s217_s22 = scalar_lea.sflag (!%p211_p5), [#allocation4], %s994_s11  ;;  %s220_s13 = scalar_lea.vmem (!%p211_p5), [#allocation3], %s635_s21 }
  0x38   : > { %820 = dma.done.wait (%p930_p8), %s217_s22, 128  }
  0x39   : > { %822 = vsyncadd (%p930_p8), %s217_s22, 4294967168  ;;  %p252_p9 = scmp.lt.s32.totalorder %s841_s18, 1  ;;  %v852_v0 = vmov 0.0   ;;  %vm853_vm0 = vmmov 0   ;;  %vm262_vm1 = vcmask 15360   ;;  %v259_v1 = vld [vmem:[%s220_s13] sm:$0xff] }
  0x3a   : > { %654 = vmatprep.subr.mxu0 %v852_v0  ;;  %659 = vmatprep.subr.mxu1 %v852_v0  ;;  %vm278_vm2 = vcmask 64512   ;;  %s854_s27 = smov 126   ;;  %s855_s26 = smov 127   ;;  %v266_v3 = vld [vmem:[%s1084_s2] sm:$0xff]  ;;  %v856_v4 = vmov 0   ;;  %vm275_vm3 = vcmask 1039360  }
  0x3b   : > { %s253_s10 = scalar_select %p252_p9, %s841_s18, 1  ;;  %656 = vmatprep.mubr.msk.f32.mxu0 %vm853_vm0, %v852_v0  ;;  %661 = vmatprep.mubr.msk.f32.mxu1 %vm853_vm0, %v852_v0  ;;  %v508_v6 = vld [vmem:[%s1085_s3] sm:$0xff]  ;;  %vm431_vm4 = vcmask 1031168   ;;  %v638_v11 = vld [vmem:[%s1084_s2 + $0x8] sm:$0xff]  ;;  %v641_v14 = vld [vmem:[%s1084_s2 + $0x10] sm:$0xff] }
  0x3c   : > { %427 = vrot.lane.b32.xlu1 %v259_v1, %s854_s27  ;;  %271 = vrot.lane.b32.xlu0 %v259_v1, %s855_s26  ;;  %s251_s14 = scalar_lea.vmem [#allocation6], %s635_s21  ;;  %s517_s6 = scalar_lea.sflag [#allocation5], %s994_s11 }
  0x3d   : > { %s637_s12 = sshll.u32 %s253_s10, 3  ;;  %660 = vmatpush3.msra.mxu1 %v259_v1  ;;  %736 = vset.pattern.permute.xlu0 %v856_v4  ;;  %s531_s24 = sshll.u32 %s251_s14, 4  ;;  %s1035_s24 = int_to_ptr.vmem [resolvable:$true] %s531_s24 }
  0x3e   : > { %s258_s25 = scalar_lea.vmem %s1083_s1, %s637_s12  ;;  %662 = vmatmul.mubr.msk.f32.vlgmr.msra.gmra.mrb[0].mxu1 %vm278_vm2, %v266_v3  ;;  %s644_s12 = sshll.u32 %s841_s18, 7 }
  0x3f   : > { %v261_v2 = vld [vmem:[%s258_s25] sm:$0xff]  ;;  %s767_s5 = scalar_lea.vmem %s1035_s24, 128  ;;  %p1095_p11 = scmp.ne.s32.totalorder %s1090_s28, 0 }
  0x40   : > { %263 = vst.msk [vmem:[#allocation2 + $0x8] sm:$0xff] %vm262_vm1, %v261_v2  ;;  %p768_p8 = scmp.ne.s32.totalorder %s1035_s24, %s767_s5  ;;  %s857_s18 = smov [#allocation6]  }
  0x41   : > { %s771_s21 = sshll.u32 %s857_s18, 4  ;;  %s772_s21 = int_to_ptr.vmem [resolvable:$false] %s771_s21 }
  0x42   : > { %p769_p0 = pnand %p768_p8, %p1095_p11  ;;  %s773_s7 = scalar_lea.vmem %s772_s21, 256 }
  0x43   : > { %p774_p13 = scmp.lt.s32.totalorder %s1035_s24, %s772_s21  ;;  %p775_p3 = scmp.lt.s32.totalorder %s773_s7, %s767_s5 }
  0x44   : > { %p770_p7 = pneg %p769_p0 }
  0x45   : > { %p776_p6 = por %p775_p3, %p774_p13 }
  0x47   : > { %v265_v5 = vld [vmem:[#allocation2 + $0x8] sm:$0xff]  ;;  %p777_p4 = pnand %p776_p6, %p770_p7 }
  0x48   : > { %429 = vrot.lane.b32.xlu1 %v265_v5, %s854_s27  ;;  %273 = vrot.lane.b32.xlu0 %v265_v5, %s855_s26  ;;  %s1033_s26 = scalar_lea.hbm %s1086_s4, %s644_s12 }
  0x4c   : > { %511 = vperm.xlu0 %736, %v508_v6  }
  0xae   : > { %v428_v7 = vpop.permute.xlu1 %427  ;;  %v272_v8 = vpop.permute.xlu0 %271 }
  0xba   : > { %v430_v9 = vpop.permute.xlu1 %429  ;;  %v274_v10 = vpop.permute.xlu0 %273 }
  0xbb   : > { %v276_v12 = vsel %vm275_vm3, %v272_v8, %v274_v10  ;;  %v432_v13 = vsel %vm431_vm4, %v428_v7, %v430_v9 }
  0xbc   : > { %655 = vmatpush3.msra.mxu0 %v276_v12 }
  0xbd   : > { %657 = vmatmul.mubr.msk.f32.vlgmr.msra.gmra.mrb[0].mxu0 %vm278_vm2, %v638_v11  ;;  %664 = vmatprep.subr.mxu0 %v852_v0 }
  0xbe   : > { %665 = vmatpush3.msra.mxu0 %v432_v13  ;;  %666 = vmatprep.mubr.msk.f32.mxu0 %vm853_vm0, %v852_v0 }
  0xc1   : > { %667 = vmatmul.mubr.msk.f32.vlgmr.msra.gmra.mrb[2].mxu0 %vm278_vm2, %v641_v14 }
  0xcb   : > { %v512_v21 = vpop.permute.xlu0 %511 }
 0x111   : > { %v421_v15 = vpop.f32.mrb[0].mxu1 }
 0x112   : > { %v663_v16 = vpop.f32.mrb[1].mxu1 }
 0x190   : > { %v348_v17 = vpop.f32.mrb[0].mxu0 }
 0x191   : > { %v658_v18 = vpop.f32.mrb[1].mxu0  ;;  %v422_v19 = vadd.f32 %v421_v15, %v348_v17 }
 0x194   : > { %v503_v20 = vpop.f32.mrb[2].mxu0 }
 0x195   : > { %v507_v22 = vadd.f32 %v503_v20, %v422_v19  ;;  %v668_v23 = vpop.f32.mrb[3].mxu0 }
 0x197   : > { %v514_v24 = vadd.f32 %v512_v21, %v507_v22 }
 0x199   : > { %515 = vst [vmem:[%s251_s14] sm:$0xff] %v514_v24 }
 0x19a   : > { %780 = shalt.err (!%p777_p4)
}
 0x19b   : > { %s781_s11 = scalar_lea.hbm %s1033_s26, 128  ;;  %s785_s22 = scalar_lea.hbm %s1086_s4, 256 }
 0x19c   : > { %p782_p10 = scmp.ne.s32.totalorder %s1033_s26, %s781_s11  ;;  %p786_p2 = scmp.lt.u32.totalorder %s1033_s26, %s1086_s4 }
 0x19d   : > { %p787_p5 = scmp.lt.u32.totalorder %s785_s22, %s781_s11  ;;  %p789_p8 = scmp.lt.u32.totalorder %s781_s11, %s1033_s26 }
 0x19e   : > { %p783_p12 = pnand %p782_p10, %p1095_p11 }
 0x19f   : > { %p788_p9 = por %p787_p5, %p786_p2 }
 0x1a0   : > { %p784_p1 = pneg %p783_p12 }
 0x1a1   : > { %p790_p0 = por %p789_p8, %p788_p9 }
 0x1a3   : > { %p791_p7 = pnand %p790_p0, %p784_p1 }
 0x1a5   : > { %794 = shalt.err (!%p791_p7)
}
 0x1a6   : > { %671 = dma.vmem_to_hbm [thread:$0]  (%p1095_p11), %s1035_s24, 128, %s1033_s26, %s517_s6  }
 0x1a7 PF: > { %s543_s12 = sand.u32 1, %s829_s15   ;;  %p1096_p13 = scmp.ne.s32.totalorder %s1091_s30, 0 }
 0x1a8   : > { %p1097_p3 = scmp.ge.s32.totalorder %s849_s20, 2  ;;  %s544_s14 = scalar_lea.sflag [#allocation5], %s543_s12 }
 0x1aa   : > { %p678_p6 = pnand %p1097_p3, %p1096_p13 }
 0x1ac   : > { %824 = dma.done.wait (!%p678_p6), %s544_s14, 128  }
 0x1ad   : > { %826 = vsyncadd (!%p678_p6), %s544_s14, 4294967168  ;;  %s20_s20 = sadd.s32 1, %s849_s20   ;;  %s1098_s15 = smov %s833_s16 }
 0x1ae   : > { %p17_p4 = scmp.ge.s32.totalorder %s20_s20, 4   ;;  %s1099_s16 = smov %s837_s17 }
 0x1af   : > { %s1100_s17 = smov %s939_s29  ;;  %s1101_s18 = smov %s845_s19 }
 0x1b0   : > { %s1102_s19 = smov %s1104_s23  ;;  %19 = sbr.rel (!%p17_p4) target bundleno = 6 (0x6), region = 86 }
 0x1b7   :  { %549 = vsyncpa [#allocation4], 1 }
 0x1b8   :  { %551 = vsyncpa [#allocation4 + $0x1], 1 }
 0x1b9   :  { %552 = vsyncpa [#allocation5], 1 }
 0x1ba   :  { %554 = vsyncpa [#allocation5 + $0x1], 1 }

</bundles_post_ra>
